<compile_context>
chip_gen: v5e
topology: v5e:2x2
jax: 0.10.0
libtpu: 0.0.40
codegen_flags: <defaults>
</compile_context>

<pallas_src>
import math

import numpy as np

import jax
import jax.numpy as jnp
from jax.experimental import pallas as pl
from jax.experimental.pallas import tpu as pltpu


# ----------------------------------------------------------------------------
# helpers
# ----------------------------------------------------------------------------
def _round_up(v, m):
    return (v + m - 1) // m * m


def _pad2(a, rows, cols, dtype):
    """Pad a 2-D array to (rows, cols) and cast; skips the pad pass entirely
    when the array is already aligned (pure cast, or no-op if dtype matches)."""
    a = jnp.asarray(a)
    r, c = a.shape
    if (r, c) == (rows, cols):
        return a.astype(dtype)
    return jnp.zeros((rows, cols), dtype).at[:r, :c].set(a.astype(dtype))


def _vmem_capacity_bytes():
    try:
        return int(pltpu.get_tpu_info().vmem_capacity_bytes)
    except Exception:
        return 64 * 2**20  # conservative: v7x per-core physical VMEM


def _pick_tile_m(n_p, max_tile=512, target_steps=8):
    """Row tile: large enough to amortize per-step overhead (~0.35 us), small
    enough that the 'parallel' row axis has several steps (so v7x's two
    TensorCores both get work) and the padded remainder block stays small."""
    if n_p <= 32:
        return n_p
    tile = min(max_tile, _round_up(pl.cdiv(n_p, target_steps), 16))
    return max(32, min(tile, n_p))


# ----------------------------------------------------------------------------
# kernels
# ----------------------------------------------------------------------------
def _linear_kernel(x_ref, w_ref, b_ref, o_ref):
    # Folded FineTuneModel: y = x @ W_eff + b_eff.
    # bf16 MXU operands, f32 accumulation, bias add in f32, store in out dtype.
    y = jnp.dot(x_ref[...], w_ref[...], preferred_element_type=jnp.float32)
    o_ref[...] = (y + b_ref[...]).astype(o_ref.dtype)


def _two_linear_kernel(x_ref, w1_ref, b1_ref, w2_ref, b2_ref, o_ref):
    # Un-folded path: h = x@W1 + b1 ; y = h@W2 + b2.  The hidden activation is
    # materialized only once, directly in bf16 (no duplicated f32 + bf16 copy).
    h = (jnp.dot(x_ref[...], w1_ref[...], preferred_element_type=jnp.float32)
         + b1_ref[...]).astype(jnp.bfloat16)
    y = jnp.dot(h, w2_ref[...], preferred_element_type=jnp.float32)
    o_ref[...] = (y + b2_ref[...]).astype(o_ref.dtype)


# ----------------------------------------------------------------------------
# one-time parameter preparation (hoisted off the per-call path)
# ----------------------------------------------------------------------------
def prepare_folded_params(w1, b1, w2, b2):
    """Fold the frozen Linear∘Linear stack once:  y = x @ (W1@W2) + (b1@W2+b2).

    Valid because FineTuneModel applies new_layer directly to the pretrained
    Linear's output with no nonlinearity in between.
    """
    w_eff = jnp.dot(w1, w2, preferred_element_type=jnp.float32)
    b_eff = (jnp.dot(jnp.reshape(b1, (1, -1)), w2,
                     preferred_element_type=jnp.float32)
             + jnp.reshape(b2, (1, -1)))
    d_in, d_out = w_eff.shape
    d_in_p, d_out_p = _round_up(d_in, 128), _round_up(d_out, 128)
    consts = (_pad2(w_eff, d_in_p, d_out_p, jnp.bfloat16),
              _pad2(b_eff, 1, d_out_p, jnp.float32))
    return dict(kernel=_linear_kernel, consts=consts,
                d_in=d_in, d_out=d_out, d_in_p=d_in_p, d_out_p=d_out_p,
                flops_per_row=2 * d_in_p * d_out_p,
                scratch_bytes_per_row=0)


def prepare_two_layer_params(w1, b1, w2, b2):
    """Pad + bf16-cast the un-folded (frozen) weights once."""
    d_in, d_hid = w1.shape
    d_out = w2.shape[1]
    d_in_p = _round_up(d_in, 128)
    d_hid_p = _round_up(d_hid, 128)
    d_out_p = _round_up(d_out, 128)
    consts = (_pad2(w1, d_in_p, d_hid_p, jnp.bfloat16),
              _pad2(jnp.reshape(b1, (1, -1)), 1, d_hid_p, jnp.float32),
              _pad2(w2, d_hid_p, d_out_p, jnp.bfloat16),
              _pad2(jnp.reshape(b2, (1, -1)), 1, d_out_p, jnp.float32))
    # TODO(synk): for very large hidden/out dims add a second 'arbitrary' grid
    # axis that streams W1/W2 in (tk, tn) blocks with an f32 accumulator
    # instead of keeping both full weight matrices VMEM-resident.
    return dict(kernel=_two_linear_kernel, consts=consts,
                d_in=d_in, d_out=d_out, d_in_p=d_in_p, d_out_p=d_out_p,
                flops_per_row=2 * (d_in_p * d_hid_p + d_hid_p * d_out_p),
                scratch_bytes_per_row=2 * d_hid_p)  # bf16 hidden tile


# ----------------------------------------------------------------------------
# pallas_call driver
# ----------------------------------------------------------------------------
def _row_tiled_call(kernel, x_p, consts, tile_m, d_out_p, out_dtype,
                    vmem_limit, cost):
    n_p, d_in_p = x_p.shape
    grid = (pl.cdiv(n_p, tile_m),)

    def build_specs(single_buffer_consts):
        in_specs = [pl.BlockSpec((tile_m, d_in_p), lambda i: (i, 0))]
        for c in consts:
            if single_buffer_consts:
                # Grid-invariant operands: single-buffer them to halve their
                # VMEM footprint (default is double-buffering every input).
                spec = pl.BlockSpec(c.shape, lambda i: (0, 0),
                                    pipeline_mode=pl.Buffered(1))
            else:
                spec = pl.BlockSpec(c.shape, lambda i: (0, 0))
            in_specs.append(spec)
        return in_specs

    def run(single_buffer_consts):
        return pl.pallas_call(
            kernel,
            out_shape=jax.ShapeDtypeStruct((n_p, d_out_p), out_dtype),
            grid=grid,
            in_specs=build_specs(single_buffer_consts),
            out_specs=pl.BlockSpec((tile_m, d_out_p), lambda i: (i, 0)),
            compiler_params=pltpu.CompilerParams(
                dimension_semantics=("parallel",),
                vmem_limit_bytes=vmem_limit),
            cost_estimate=cost,
        )(x_p, *consts)

    try:
        out = run(True)
        jax.block_until_ready(out)
        return out
    except Exception:
        # Fallback for jax versions that reject pipeline_mode=pl.Buffered(1)
        # on grid-invariant BlockSpecs: plain (double-buffered) specs.
        return run(False)


def finetune_forward(x, params, *, max_tile_m=512, out_dtype=jnp.float32):
    """Apply a prepared FineTuneModel stack to x: (N, d_in) -> (N, d_out)."""
    n, d_in = x.shape
    assert d_in == params["d_in"], (d_in, params["d_in"])
    d_in_p, d_out_p = params["d_in_p"], params["d_out_p"]
    d_out = params["d_out"]

    # Rows padded only to the bf16 sublane pack (16), NOT rounded to tile_m;
    # the grid uses cdiv so the last block may be partial (Pallas masks it).
    n_p = _round_up(n, 16)
    tile_m = _pick_tile_m(n_p, max_tile_m)
    x_p = _pad2(x, n_p, d_in_p, jnp.bfloat16)

    out_bytes = np.dtype(out_dtype).itemsize
    const_bytes = sum(int(c.size) * c.dtype.itemsize for c in params["consts"])

    # VMEM budget: double-buffered x/out tiles + resident weights (counted
    # double-buffered so the fallback path stays legal) + hidden scratch.
    # Capped at 85% of this generation's physical VMEM (64 MiB on v7x,
    # 128 MiB on v5e/v6e).
    vmem_bytes = (2 * tile_m * d_in_p * 2
                  + 2 * tile_m * d_out_p * out_bytes
                  + 2 * const_bytes
                  + tile_m * params["scratch_bytes_per_row"])
    vmem_limit = int(min(max(32 * 2**20, vmem_bytes + 8 * 2**20),
                         int(0.85 * _vmem_capacity_bytes())))

    # Cost hint in PADDED dims — what the MXU / HBM actually process.
    cost = pl.CostEstimate(
        flops=n_p * params["flops_per_row"],
        transcendentals=0,
        bytes_accessed=int(x_p.size) * 2 + const_bytes
        + n_p * d_out_p * out_bytes)

    out = _row_tiled_call(params["kernel"], x_p, params["consts"], tile_m,
                          d_out_p, out_dtype, vmem_limit, cost)

    if n_p != n or d_out_p != d_out:
        out = out[:n, :d_out]
    return out


# ----------------------------------------------------------------------------
# demo / self-check
# ----------------------------------------------------------------------------
def _init_linear(key, d_in, d_out):
    """PyTorch-style nn.Linear init: U(-1/sqrt(d_in), 1/sqrt(d_in))."""
    kw, kb = jax.random.split(key)
    bound = 1.0 / math.sqrt(d_in)
    # Stored already transposed relative to PyTorch's (out, in) convention.
    w = jax.random.uniform(kw, (d_in, d_out), jnp.float32, -bound, bound)
    b = jax.random.uniform(kb, (1, d_out), jnp.float32, -bound, bound)
    return w, b


if __name__ == "__main__":
    key = jax.random.PRNGKey(0)
    k_x, k_l1, k_l2 = jax.random.split(key, 3)

    # Small shapes consistent with the module's Linear->Linear example.
    N, D_IN, D_HID, D_OUT = 8, 32, 64, 16

    x = jax.random.normal(k_x, (N, D_IN), jnp.float32)
    w1, b1 = _init_linear(k_l1, D_IN, D_HID)   # pretrained_model (frozen)
    w2, b2 = _init_linear(k_l2, D_HID, D_OUT)  # new_layer

    y_ref = (x @ w1 + b1) @ w2 + b2            # plain-JAX f32 reference

    # Main path: frozen Linear∘Linear folded once, single-matmul kernel.
    folded = prepare_folded_params(w1, b1, w2, b2)
    y = finetune_forward(x, folded)
    jax.block_until_ready(y)
    assert y.shape == (N, D_OUT)
    assert jnp.allclose(y, y_ref, atol=5e-2, rtol=5e-2), (
        float(jnp.max(jnp.abs(y - y_ref))))

    # Un-folded fused two-matmul path (kept for non-foldable stacks).
    two = prepare_two_layer_params(w1, b1, w2, b2)
    y2 = finetune_forward(x, two)
    jax.block_until_ready(y2)
    assert y2.shape == (N, D_OUT)
    assert jnp.allclose(y2, y_ref, atol=5e-2, rtol=5e-2), (
        float(jnp.max(jnp.abs(y2 - y_ref))))

    print("KERNEL_OK")
</pallas_src>

<mosaic_0001>
module attributes {stable_mosaic.version = 11 : i64} {
  func.func @_linear_kernel(%arg0: i32, %arg1: memref<16x128xbf16, #tpu.memory_space<vmem>>, %arg2: memref<128x128xbf16, #tpu.memory_space<vmem>>, %arg3: memref<1x128xf32, #tpu.memory_space<vmem>>, %arg4: memref<16x128xf32, #tpu.memory_space<vmem>>) attributes {dimension_semantics = [#tpu.dimension_semantics<parallel>], iteration_bounds = array<i64: 1>, scalar_prefetch = 0 : i64, scratch_operands = 0 : i64, tpu.core_type = #tpu.core_type<tc>, window_params = [{transform_indices = @transform_0, window_bounds = array<i64: 16, 128>}, {pipeline_mode = #tpu.pipeline_mode<synchronous>, transform_indices = @transform_1, window_bounds = array<i64: 128, 128>}, {pipeline_mode = #tpu.pipeline_mode<synchronous>, transform_indices = @transform_2, window_bounds = array<i64: 1, 128>}, {transform_indices = @transform_3, window_bounds = array<i64: 16, 128>}]} {
    %c0 = arith.constant 0 : index
    %c0_0 = arith.constant 0 : index
    %0 = vector.load %arg1[%c0, %c0_0] : memref<16x128xbf16, #tpu.memory_space<vmem>>, vector<16x128xbf16>
    %c0_1 = arith.constant 0 : index
    %c0_2 = arith.constant 0 : index
    %1 = vector.load %arg2[%c0_1, %c0_2] : memref<128x128xbf16, #tpu.memory_space<vmem>>, vector<128x128xbf16>
    %cst = arith.constant dense<0.000000e+00> : vector<16x128xf32>
    %2 = tpu.matmul %0, %1, %cst {dimension_numbers = #tpu.dot_dimension_numbers<[1], [0], [0], [1], [0, 0, 1, 1], [], []>} : vector<16x128xbf16>, vector<128x128xbf16>, vector<16x128xf32> -> vector<16x128xf32>
    %c0_3 = arith.constant 0 : index
    %c0_4 = arith.constant 0 : index
    %3 = vector.load %arg3[%c0_3, %c0_4] : memref<1x128xf32, #tpu.memory_space<vmem>>, vector<1x128xf32>
    %4 = vector.broadcast %3 : vector<1x128xf32> to vector<16x128xf32>
    %5 = arith.addf %2, %4 : vector<16x128xf32>
    %c0_5 = arith.constant 0 : index
    %c0_6 = arith.constant 0 : index
    %6 = vector.load %arg4[%c0_5, %c0_6] : memref<16x128xf32, #tpu.memory_space<vmem>>, vector<16x128xf32>
    tpu.vector_store %arg4[%c0_5, %c0_6], %5 {strides = array<i32>} : memref<16x128xf32, #tpu.memory_space<vmem>>, vector<16x128xf32>,
    return
  }
  func.func @transform_0(%arg0: i32) -> (i32, i32) {
    %c0_i32 = arith.constant 0 : i32
    %c0_i32_0 = arith.constant 0 : i32
    return %arg0, %c0_i32 : i32, i32
  }
  func.func @transform_1(%arg0: i32) -> (i32, i32) {
    %c0_i32 = arith.constant 0 : i32
    %c0_i32_0 = arith.constant 0 : i32
    %c0_i32_1 = arith.constant 0 : i32
    return %c0_i32, %c0_i32_0 : i32, i32
  }
  func.func @transform_2(%arg0: i32) -> (i32, i32) {
    %c0_i32 = arith.constant 0 : i32
    %c0_i32_0 = arith.constant 0 : i32
    %c0_i32_1 = arith.constant 0 : i32
    return %c0_i32, %c0_i32_0 : i32, i32
  }
  func.func @transform_3(%arg0: i32) -> (i32, i32) {
    %c0_i32 = arith.constant 0 : i32
    %c0_i32_0 = arith.constant 0 : i32
    return %arg0, %c0_i32 : i32, i32
  }
}

module attributes {stable_mosaic.version = 11 : i64} {
  func.func @_linear_kernel(%arg0: i32, %arg1: memref<16x128xbf16, #tpu.memory_space<vmem>>, %arg2: memref<128x128xbf16, #tpu.memory_space<vmem>>, %arg3: memref<1x128xf32, #tpu.memory_space<vmem>>, %arg4: memref<16x128xf32, #tpu.memory_space<vmem>>) attributes {dimension_semantics = [#tpu.dimension_semantics<parallel>], iteration_bounds = array<i64: 1>, scalar_prefetch = 0 : i64, scratch_operands = 0 : i64, tpu.core_type = #tpu.core_type<tc>, window_params = [{transform_indices = @transform_0, window_bounds = array<i64: 16, 128>}, {pipeline_mode = #tpu.pipeline_mode<synchronous>, transform_indices = @transform_1, window_bounds = array<i64: 128, 128>}, {pipeline_mode = #tpu.pipeline_mode<synchronous>, transform_indices = @transform_2, window_bounds = array<i64: 1, 128>}, {transform_indices = @transform_3, window_bounds = array<i64: 16, 128>}]} {
    %c0 = arith.constant 0 : index
    %c0_0 = arith.constant 0 : index
    %0 = vector.load %arg1[%c0, %c0_0] : memref<16x128xbf16, #tpu.memory_space<vmem>>, vector<16x128xbf16>
    %c0_1 = arith.constant 0 : index
    %c0_2 = arith.constant 0 : index
    %1 = vector.load %arg2[%c0_1, %c0_2] : memref<128x128xbf16, #tpu.memory_space<vmem>>, vector<128x128xbf16>
    %cst = arith.constant dense<0.000000e+00> : vector<16x128xf32>
    %2 = tpu.matmul %0, %1, %cst {dimension_numbers = #tpu.dot_dimension_numbers<[1], [0], [0], [1], [0, 0, 1, 1], [], []>} : vector<16x128xbf16>, vector<128x128xbf16>, vector<16x128xf32> -> vector<16x128xf32>
    %c0_3 = arith.constant 0 : index
    %c0_4 = arith.constant 0 : index
    %3 = vector.load %arg3[%c0_3, %c0_4] : memref<1x128xf32, #tpu.memory_space<vmem>>, vector<1x128xf32>
    %4 = vector.broadcast %3 : vector<1x128xf32> to vector<16x128xf32>
    %5 = arith.addf %2, %4 : vector<16x128xf32>
    %c0_5 = arith.constant 0 : index
    %c0_6 = arith.constant 0 : index
    %6 = vector.load %arg4[%c0_5, %c0_6] : memref<16x128xf32, #tpu.memory_space<vmem>>, vector<16x128xf32>
    tpu.vector_store %arg4[%c0_5, %c0_6], %5 {strides = array<i32>} : memref<16x128xf32, #tpu.memory_space<vmem>>, vector<16x128xf32>,
    return
  }
  func.func @transform_0(%arg0: i32) -> (i32, i32) {
    %c0_i32 = arith.constant 0 : i32
    %c0_i32_0 = arith.constant 0 : i32
    return %arg0, %c0_i32 : i32, i32
  }
  func.func @transform_1(%arg0: i32) -> (i32, i32) {
    %c0_i32 = arith.constant 0 : i32
    %c0_i32_0 = arith.constant 0 : i32
    %c0_i32_1 = arith.constant 0 : i32
    return %c0_i32, %c0_i32_0 : i32, i32
  }
  func.func @transform_2(%arg0: i32) -> (i32, i32) {
    %c0_i32 = arith.constant 0 : i32
    %c0_i32_0 = arith.constant 0 : i32
    %c0_i32_1 = arith.constant 0 : i32
    return %c0_i32, %c0_i32_0 : i32, i32
  }
  func.func @transform_3(%arg0: i32) -> (i32, i32) {
    %c0_i32 = arith.constant 0 : i32
    %c0_i32_0 = arith.constant 0 : i32
    return %arg0, %c0_i32 : i32, i32
  }
}

</mosaic_0001>

<bundles_post_ra>
// kernel: tpu_custom_call.1
= control target key start
LH: loop header
LB: loop body
LE: loop exit
PB: predicated region body
PF: predicated region fallthrough
CT: control target
= control target key end

     0   :  { %8 = vsyncpa [#allocation3], 0  ;;  %s329_s0 = inlined_call_operand.hbm [shape: bf16[16,128], index: 0, kind: input, shape index: {}]   ;;  %s330_s1 = inlined_call_operand.hbm [shape: bf16[128,128], index: 1, kind: input, shape index: {}]   ;;  %s331_s2 = inlined_call_operand.vmem [shape: f32[1,128], index: 2, kind: input, shape index: {}]   ;;  %s332_s3 = inlined_call_operand.hbm [shape: f32[16,128], index: 3, kind: output, shape index: {}]  }
   0x1   :  { %9 = vsyncpa [#allocation6], 0 }
   0x2   :  { %10 = vsyncpa [#allocation4], 0  ;;  %s15_s14 = sshll.u32 %s329_s0, 4  ;;  %s290_s15 = smov [#allocation2]   ;;  %s16_s14 = int_to_ptr.hbm [resolvable:$true] %s15_s14 }
   0x3   :  { %s17_s16 = sshll.u32 %s290_s15, 4  ;;  %s28_s19 = sshll.u32 %s330_s1, 4  ;;  %s18_s16 = int_to_ptr.vmem [resolvable:$true] %s17_s16  ;;  %s29_s19 = int_to_ptr.hbm [resolvable:$true] %s28_s19 }
   0x4   :  { %s291_s20 = smov 64   ;;  %s292_s21 = smov 4  }
   0x5   :  { %23 = dma.hbm_to_vmem [thread:$0]  %s16_s14, 128, %s18_s16, [#allocation3], %s291_s20, %s291_s20, %s292_s21  }
   0x6   :  { %s293_s22 = smov [#allocation5]  }
   0x7   :  { %s30_s23 = sshll.u32 %s293_s22, 4  ;;  %s31_s23 = int_to_ptr.vmem [resolvable:$true] %s30_s23 }
   0x8   :  { %36 = dma.hbm_to_vmem [thread:$0]  %s29_s19, 1024, %s31_s23, [#allocation6], %s291_s20, %s291_s20, %s292_s21  }
   0x9   :  { %284 = dma.done.wait [#allocation3], 128  }
   0xa   :  { %285 = vsyncadd [#allocation3], 4294967168 }
   0xb   :  { %286 = dma.done.wait [#allocation6], 1024  }
   0xc   :  { %287 = vsyncadd [#allocation6], 4294966272  ;;  %v203_v0 = vld [vmem:[#allocation5 + $0x38] sm:$0xff]  ;;  %v202_v1 = vld [vmem:[#allocation5 + $0x30] sm:$0xff]  ;;  %s294_s24 = smov [#allocation7]   ;;  %s145_s28 = sshll.u32 %s332_s3, 4  ;;  %s146_s28 = int_to_ptr.hbm [resolvable:$true] %s145_s28 }
   0xd   :  { %123 = vmatpush.bf16.msra.mxu0 %v203_v0  ;;  %v201_v2 = vld [vmem:[#allocation5 + $0x28] sm:$0xff]  ;;  %v200_v3 = vld [vmem:[#allocation5 + $0x20] sm:$0xff]  ;;  %v199_v4 = vld [vmem:[#allocation5 + $0x18] sm:$0xff]  ;;  %s143_s25 = sshll.u32 %s294_s24, 4  ;;  %s295_s29 = smov 128   ;;  %s144_s25 = int_to_ptr.vmem [resolvable:$true] %s143_s25 }
   0xe   :  { %v198_v5 = vld [vmem:[#allocation5 + $0x10] sm:$0xff]  ;;  %v197_v6 = vld [vmem:[#allocation5 + $0x8] sm:$0xff]  ;;  %v196_v7 = vld [vmem:[#allocation5] sm:$0xff]  ;;  %s296_s30 = smov 8  }
   0xf   :  { %v195_v8 = vld [vmem:[#allocation2] sm:$0xff] }
  0x10   :  { %v211_v9 = vld [vmem:[%s331_s2] ss:$0 sm:$0xff] }
  0x11   :  { %124 = vmatpush.bf16.msra.mxu0 %v202_v1 }
  0x15   :  { %125 = vmatpush.bf16.msra.mxu0 %v201_v2 }
  0x19   :  { %126 = vmatpush.bf16.msra.mxu0 %v200_v3 }
  0x1d   :  { %127 = vmatpush.bf16.msra.mxu0 %v199_v4 }
  0x21   :  { %128 = vmatpush.bf16.msra.mxu0 %v198_v5 }
  0x25   :  { %129 = vmatpush.bf16.msra.mxu0 %v197_v6 }
  0x29   :  { %130 = vmatpush.bf16.msra.mxu0 %v196_v7 }
  0x2c   :  { %131 = vmatmul.bf16.vlgmr.msra.gmra.mxu0 %v195_v8 }
  0xa9   :  { %v132_v10 = vpop.f32.mrf.mxu0 }
  0xaa   :  { %v133_v11 = vadd.f32 %v211_v9, %v132_v10 }
  0xac   :  { %137 = vst [vmem:[#allocation7] sm:$0xff] %v133_v11 }
  0xb1   :  { %v134_v12 = vpop.f32.mrf.mxu0 }
  0xb2   :  { %v135_v13 = vadd.f32 %v211_v9, %v134_v12 }
  0xb4   :  { %138 = vst [vmem:[#allocation7 + $0x8] sm:$0xff] %v135_v13 }
  0xb5   :  { %151 = dma.vmem_to_hbm [thread:$0]  %s144_s25, 256, %s146_s28, [#allocation4], %s295_s29, %s295_s29, %s296_s30  }
  0xb6   :  { %288 = dma.done.wait [#allocation4], 256  }
  0xb7   :  { %289 = vsyncadd [#allocation4], 4294967040 }
  0xb8   :  { %156 = vsyncpa [#allocation3], 1 }
  0xb9   :  { %157 = vsyncpa [#allocation6], 1 }
  0xba   :  { %158 = vsyncpa [#allocation4], 1 }

// kernel: tpu_custom_call.1
= control target key start
LH: loop header
LB: loop body
LE: loop exit
PB: predicated region body
PF: predicated region fallthrough
CT: control target
= control target key end

     0   :  { %8 = vsyncpa [#allocation3], 0  ;;  %s329_s0 = inlined_call_operand.hbm [shape: bf16[16,128], index: 0, kind: input, shape index: {}]   ;;  %s330_s1 = inlined_call_operand.hbm [shape: bf16[128,128], index: 1, kind: input, shape index: {}]   ;;  %s331_s2 = inlined_call_operand.vmem [shape: f32[1,128], index: 2, kind: input, shape index: {}]   ;;  %s332_s3 = inlined_call_operand.hbm [shape: f32[16,128], index: 3, kind: output, shape index: {}]  }
   0x1   :  { %9 = vsyncpa [#allocation6], 0 }
   0x2   :  { %10 = vsyncpa [#allocation4], 0  ;;  %s15_s14 = sshll.u32 %s329_s0, 4  ;;  %s290_s15 = smov [#allocation2]   ;;  %s16_s14 = int_to_ptr.hbm [resolvable:$true] %s15_s14 }
   0x3   :  { %s17_s16 = sshll.u32 %s290_s15, 4  ;;  %s28_s19 = sshll.u32 %s330_s1, 4  ;;  %s18_s16 = int_to_ptr.vmem [resolvable:$true] %s17_s16  ;;  %s29_s19 = int_to_ptr.hbm [resolvable:$true] %s28_s19 }
   0x4   :  { %s291_s20 = smov 64   ;;  %s292_s21 = smov 4  }
   0x5   :  { %23 = dma.hbm_to_vmem [thread:$0]  %s16_s14, 128, %s18_s16, [#allocation3], %s291_s20, %s291_s20, %s292_s21  }
   0x6   :  { %s293_s22 = smov [#allocation5]  }
   0x7   :  { %s30_s23 = sshll.u32 %s293_s22, 4  ;;  %s31_s23 = int_to_ptr.vmem [resolvable:$true] %s30_s23 }
   0x8   :  { %36 = dma.hbm_to_vmem [thread:$0]  %s29_s19, 1024, %s31_s23, [#allocation6], %s291_s20, %s291_s20, %s292_s21  }
   0x9   :  { %284 = dma.done.wait [#allocation3], 128  }
   0xa   :  { %285 = vsyncadd [#allocation3], 4294967168 }
   0xb   :  { %286 = dma.done.wait [#allocation6], 1024  }
   0xc   :  { %287 = vsyncadd [#allocation6], 4294966272  ;;  %v203_v0 = vld [vmem:[#allocation5 + $0x38] sm:$0xff]  ;;  %v202_v1 = vld [vmem:[#allocation5 + $0x30] sm:$0xff]  ;;  %s294_s24 = smov [#allocation7]   ;;  %s145_s28 = sshll.u32 %s332_s3, 4  ;;  %s146_s28 = int_to_ptr.hbm [resolvable:$true] %s145_s28 }
   0xd   :  { %123 = vmatpush.bf16.msra.mxu0 %v203_v0  ;;  %v201_v2 = vld [vmem:[#allocation5 + $0x28] sm:$0xff]  ;;  %v200_v3 = vld [vmem:[#allocation5 + $0x20] sm:$0xff]  ;;  %v199_v4 = vld [vmem:[#allocation5 + $0x18] sm:$0xff]  ;;  %s143_s25 = sshll.u32 %s294_s24, 4  ;;  %s295_s29 = smov 128   ;;  %s144_s25 = int_to_ptr.vmem [resolvable:$true] %s143_s25 }
   0xe   :  { %v198_v5 = vld [vmem:[#allocation5 + $0x10] sm:$0xff]  ;;  %v197_v6 = vld [vmem:[#allocation5 + $0x8] sm:$0xff]  ;;  %v196_v7 = vld [vmem:[#allocation5] sm:$0xff]  ;;  %s296_s30 = smov 8  }
   0xf   :  { %v195_v8 = vld [vmem:[#allocation2] sm:$0xff] }
  0x10   :  { %v211_v9 = vld [vmem:[%s331_s2] ss:$0 sm:$0xff] }
  0x11   :  { %124 = vmatpush.bf16.msra.mxu0 %v202_v1 }
  0x15   :  { %125 = vmatpush.bf16.msra.mxu0 %v201_v2 }
  0x19   :  { %126 = vmatpush.bf16.msra.mxu0 %v200_v3 }
  0x1d   :  { %127 = vmatpush.bf16.msra.mxu0 %v199_v4 }
  0x21   :  { %128 = vmatpush.bf16.msra.mxu0 %v198_v5 }
  0x25   :  { %129 = vmatpush.bf16.msra.mxu0 %v197_v6 }
  0x29   :  { %130 = vmatpush.bf16.msra.mxu0 %v196_v7 }
  0x2c   :  { %131 = vmatmul.bf16.vlgmr.msra.gmra.mxu0 %v195_v8 }
  0xa9   :  { %v132_v10 = vpop.f32.mrf.mxu0 }
  0xaa   :  { %v133_v11 = vadd.f32 %v211_v9, %v132_v10 }
  0xac   :  { %137 = vst [vmem:[#allocation7] sm:$0xff] %v133_v11 }
  0xb1   :  { %v134_v12 = vpop.f32.mrf.mxu0 }
  0xb2   :  { %v135_v13 = vadd.f32 %v211_v9, %v134_v12 }
  0xb4   :  { %138 = vst [vmem:[#allocation7 + $0x8] sm:$0xff] %v135_v13 }
  0xb5   :  { %151 = dma.vmem_to_hbm [thread:$0]  %s144_s25, 256, %s146_s28, [#allocation4], %s295_s29, %s295_s29, %s296_s30  }
  0xb6   :  { %288 = dma.done.wait [#allocation4], 256  }
  0xb7   :  { %289 = vsyncadd [#allocation4], 4294967040 }
  0xb8   :  { %156 = vsyncpa [#allocation3], 1 }
  0xb9   :  { %157 = vsyncpa [#allocation6], 1 }
  0xba   :  { %158 = vsyncpa [#allocation4], 1 }

</bundles_post_ra>
